<compile_context>
chip_gen: v7x
topology: tpu7x:2x2x1
jax: 0.10.0
libtpu: 0.0.40
codegen_flags: <defaults>
</compile_context>

<pallas_src>
import functools

import jax
import jax.numpy as jnp
from jax.experimental import pallas as pl
from jax.experimental.pallas import tpu as pltpu


def _round_up(x, m):
    return ((x + m - 1) // m) * m


def _patch_embed_kernel(x_ref, w_ref, b_ref, o_ref):
    # x_ref: (TM, Kp) patches; w_ref: (Kp, Ep); b_ref: (1, Ep) f32; o_ref: (TM, Ep)
    acc = jnp.dot(x_ref[...], w_ref[...], preferred_element_type=jnp.float32)
    o_ref[...] = (acc + b_ref[...]).astype(o_ref.dtype)


@functools.partial(
    jax.jit, static_argnames=("patch_size", "tm", "compute_dtype")
)
def patch_embed_forward(x, weight, bias, *, patch_size, tm=512,
                        compute_dtype=jnp.bfloat16):
    """
    x:      (B, C, H, W)  float32, NCHW (PyTorch convention)
    weight: (E, C, P, P)  float32, PyTorch Conv2d weight layout
    bias:   (E,)          float32
    returns (B, L, E) with L = (H//P)*(W//P)
    """
    B, C, H, W = x.shape
    E = weight.shape[0]
    P = patch_size
    assert H % P == 0 and W % P == 0, "img_size must be divisible by patch_size"
    gh, gw = H // P, W // P
    L = gh * gw
    K = C * P * P
    M = B * L

    # MXU / lane alignment: pad reduction dim K and output lane dim E to 128.
    Kp = _round_up(K, 128)
    Ep = _round_up(E, 128)

    # M tile: multiple of 8 sublanes; pad M so the grid divides evenly
    # (no OOB on the last tile).
    TM = min(tm, _round_up(M, 8))
    Mp = _round_up(M, TM)

    # --- patch extraction (reshape/transpose) + alignment padding ---
    # Fused into the Pallas input DMA via allow_input_fusion under jit, so the
    # (M, K) operand does not round-trip HBM.
    patches = x.reshape(B, C, gh, P, gw, P)
    patches = jnp.transpose(patches, (0, 2, 4, 1, 3, 5)).reshape(M, K)
    patches = jnp.pad(patches, ((0, Mp - M), (0, Kp - K))).astype(compute_dtype)

    # Conv weight (E, C, P, P) -> projection matrix (Kp, Ep), zero-padded.
    w_mat = weight.reshape(E, K).T
    w_mat = jnp.pad(w_mat, ((0, Kp - K), (0, Ep - E))).astype(compute_dtype)

    # Bias stays f32 (added after the f32 accumulation).
    b_mat = jnp.pad(bias.astype(jnp.float32), (0, Ep - E)).reshape(1, Ep)

    out = pl.pallas_call(
        _patch_embed_kernel,
        out_shape=jax.ShapeDtypeStruct((Mp, Ep), x.dtype),
        grid_spec=pltpu.PrefetchScalarGridSpec(
            num_scalar_prefetch=0,
            grid=(Mp // TM,),
            in_specs=[
                pl.BlockSpec((TM, Kp), lambda i: (i, 0)),   # streamed patches
                pl.BlockSpec((Kp, Ep), lambda i: (0, 0)),   # resident weight
                pl.BlockSpec((1, Ep), lambda i: (0, 0)),    # resident bias
            ],
            out_specs=pl.BlockSpec((TM, Ep), lambda i: (i, 0)),
        ),
        compiler_params=pltpu.CompilerParams(
            dimension_semantics=("parallel",),   # v7x: shard M tiles across TCs
            allow_input_fusion=[0],              # fuse transpose/pad into input
            vmem_limit_bytes=32 * 1024 * 1024,   # safe on v5e/v6e/v7x
        ),
    )(patches, w_mat, b_mat)

    # Strip alignment padding and restore (B, L, E).
    return out[:M, :E].reshape(B, L, E)


if __name__ == "__main__":
    # Small shapes consistent with the module:
    #   img_size=16, patch_size=4, in_chans=4, embed_dim=32, batch=2
    B, C, H, W = 2, 4, 16, 16
    P = 4
    E = 32

    key = jax.random.PRNGKey(0)
    kx, kw, kb = jax.random.split(key, 3)

    x = jax.random.normal(kx, (B, C, H, W), dtype=jnp.float32)
    # deterministic synthetic Conv2d params (PyTorch layout: (E, C, P, P), (E,))
    weight = jax.random.normal(kw, (E, C, P, P), dtype=jnp.float32) * 0.02
    bias = jax.random.normal(kb, (E,), dtype=jnp.float32) * 0.02

    # reference: conv-as-patch-projection in plain JAX (f32)
    gh, gw = H // P, W // P
    L = gh * gw
    ref_patches = jnp.transpose(
        x.reshape(B, C, gh, P, gw, P), (0, 2, 4, 1, 3, 5)
    ).reshape(B, L, C * P * P)
    ref = jnp.einsum("blk,ek->ble", ref_patches, weight.reshape(E, -1)) + bias

    # f32 compute path: tight check.
    out_f32 = patch_embed_forward(
        x, weight, bias, patch_size=P, compute_dtype=jnp.float32
    )
    out_f32 = jax.block_until_ready(out_f32)
    assert out_f32.shape == (B, L, E), out_f32.shape
    assert jnp.allclose(out_f32, ref, atol=1e-4, rtol=1e-4)

    # bf16 compute path (default, used for v6e/v7x MXU): looser check.
    out_bf16 = patch_embed_forward(
        x, weight, bias, patch_size=P, compute_dtype=jnp.bfloat16
    )
    out_bf16 = jax.block_until_ready(out_bf16)
    assert out_bf16.shape == (B, L, E), out_bf16.shape
    assert jnp.allclose(out_bf16, ref, atol=2e-2, rtol=2e-2)

    print("KERNEL_OK")
</pallas_src>

<mosaic_0001>
module attributes {stable_mosaic.version = 11 : i64} {
  func.func @_patch_embed_kernel(%arg0: i32, %arg1: memref<32x128xf32, #tpu.memory_space<vmem>>, %arg2: memref<128x128xf32, #tpu.memory_space<vmem>>, %arg3: memref<1x128xf32, #tpu.memory_space<vmem>>, %arg4: memref<32x128xf32, #tpu.memory_space<vmem>>) attributes {dimension_semantics = [#tpu.dimension_semantics<parallel>], iteration_bounds = array<i64: 1>, scalar_prefetch = 0 : i64, scratch_operands = 0 : i64, tpu.core_type = #tpu.core_type<tc>, window_params = [{transform_indices = @transform_0, window_bounds = array<i64: 32, 128>}, {pipeline_mode = #tpu.pipeline_mode<synchronous>, transform_indices = @transform_1, window_bounds = array<i64: 128, 128>}, {pipeline_mode = #tpu.pipeline_mode<synchronous>, transform_indices = @transform_2, window_bounds = array<i64: 1, 128>}, {transform_indices = @transform_3, window_bounds = array<i64: 32, 128>}]} {
    %c0 = arith.constant 0 : index
    %c0_0 = arith.constant 0 : index
    %0 = vector.load %arg1[%c0, %c0_0] : memref<32x128xf32, #tpu.memory_space<vmem>>, vector<32x128xf32>
    %c0_1 = arith.constant 0 : index
    %c0_2 = arith.constant 0 : index
    %1 = vector.load %arg2[%c0_1, %c0_2] : memref<128x128xf32, #tpu.memory_space<vmem>>, vector<128x128xf32>
    %cst = arith.constant dense<0.000000e+00> : vector<32x128xf32>
    %2 = tpu.matmul %0, %1, %cst {dimension_numbers = #tpu.dot_dimension_numbers<[1], [0], [0], [1], [0, 0, 1, 1], [], []>} : vector<32x128xf32>, vector<128x128xf32>, vector<32x128xf32> -> vector<32x128xf32>
    %c0_3 = arith.constant 0 : index
    %c0_4 = arith.constant 0 : index
    %3 = vector.load %arg3[%c0_3, %c0_4] : memref<1x128xf32, #tpu.memory_space<vmem>>, vector<1x128xf32>
    %4 = vector.broadcast %3 : vector<1x128xf32> to vector<32x128xf32>
    %5 = arith.addf %2, %4 : vector<32x128xf32>
    %c0_5 = arith.constant 0 : index
    %c0_6 = arith.constant 0 : index
    %6 = vector.load %arg4[%c0_5, %c0_6] : memref<32x128xf32, #tpu.memory_space<vmem>>, vector<32x128xf32>
    tpu.vector_store %arg4[%c0_5, %c0_6], %5 {strides = array<i32>} : memref<32x128xf32, #tpu.memory_space<vmem>>, vector<32x128xf32>,
    return
  }
  func.func @transform_0(%arg0: i32) -> (i32, i32) {
    %c0_i32 = arith.constant 0 : i32
    %c0_i32_0 = arith.constant 0 : i32
    return %arg0, %c0_i32 : i32, i32
  }
  func.func @transform_1(%arg0: i32) -> (i32, i32) {
    %c0_i32 = arith.constant 0 : i32
    %c0_i32_0 = arith.constant 0 : i32
    %c0_i32_1 = arith.constant 0 : i32
    return %c0_i32, %c0_i32_0 : i32, i32
  }
  func.func @transform_2(%arg0: i32) -> (i32, i32) {
    %c0_i32 = arith.constant 0 : i32
    %c0_i32_0 = arith.constant 0 : i32
    %c0_i32_1 = arith.constant 0 : i32
    return %c0_i32, %c0_i32_0 : i32, i32
  }
  func.func @transform_3(%arg0: i32) -> (i32, i32) {
    %c0_i32 = arith.constant 0 : i32
    %c0_i32_0 = arith.constant 0 : i32
    return %arg0, %c0_i32 : i32, i32
  }
}

</mosaic_0001>

<bundles_post_ra>
// kernel: patch_embed_forward.1
= control target key start
LH: loop header
LB: loop body
LE: loop exit
PB: predicated region body
PF: predicated region fallthrough
CT: control target
= control target key end

     0   :  { %s379_s0 = inlined_call_operand.vmem [shape: f32[32,128], index: 0, kind: input, shape index: {}]   ;;  %s380_s1 = inlined_call_operand.vmem [shape: f32[128,128], index: 1, kind: input, shape index: {}]   ;;  %s381_s2 = inlined_call_operand.vmem [shape: f32[1,128], index: 2, kind: input, shape index: {}]   ;;  %s382_s3 = inlined_call_operand.hbm [shape: f32[32,128], index: 3, kind: output, shape index: {}]  }
   0x1   :  { %v19_v0 = vld [vmem:[%s380_s1] sm:$0xff]  ;;  %v20_v1 = vld [vmem:[%s380_s1 + $0x8] sm:$0xff]  ;;  %v21_v2 = vld [vmem:[%s380_s1 + $0x10] sm:$0xff] }
   0x2   :  { %v206_v3 = vpack.c.bf16 %v20_v1, %v19_v0  ;;  %v22_v4 = vld [vmem:[%s380_s1 + $0x18] sm:$0xff]  ;;  %v23_v6 = vld [vmem:[%s380_s1 + $0x20] sm:$0xff]  ;;  %v24_v7 = vld [vmem:[%s380_s1 + $0x28] sm:$0xff] }
   0x3   :  { %v210_v5 = vpack.c.bf16 %v22_v4, %v21_v2  ;;  %v214_v8 = vpack.c.bf16 %v24_v7, %v23_v6  ;;  %v15_v9 = vld [vmem:[%s379_s0] sm:$0xff]  ;;  %v17_v10 = vld [vmem:[%s379_s0 + $0x10] sm:$0xff]  ;;  %v26_v12 = vld [vmem:[%s380_s1 + $0x38] sm:$0xff] }
   0x4   :  { %207 = vmatprep.subr.bf16.mxu0 %v206_v3  ;;  %238 = vmatprep.subr.bf16.mxu1 %v206_v3  ;;  %v25_v11 = vld [vmem:[%s380_s1 + $0x30] sm:$0xff] }
   0x5   :  { %209 = vmatpush3.bf16.msra.mxu0 %v206_v3  ;;  %246 = vmatpush3.bf16.msra.mxu1 %v206_v3 }
   0x6   :  { %211 = vmatprep.subr.bf16.mxu0 %v210_v5  ;;  %239 = vmatprep.subr.bf16.mxu1 %v210_v5 }
   0x7   :  { %200 = vmatprep.mubr.f32.mxu0 %v15_v9  ;;  %203 = vmatprep.mubr.f32.mxu1 %v17_v10 }
   0x8   :  { %8 = vsyncpa [#allocation3], 0  ;;  %v218_v13 = vpack.c.bf16 %v26_v12, %v25_v11  ;;  %v27_v14 = vld [vmem:[%s380_s1 + $0x40] sm:$0xff]  ;;  %v28_v15 = vld [vmem:[%s380_s1 + $0x48] sm:$0xff]  ;;  %s281_s26 = smov [#allocation2]  }
   0x9   :  { %213 = vmatpush3.bf16.msra.mxu0 %v210_v5  ;;  %247 = vmatpush3.bf16.msra.mxu1 %v210_v5  ;;  %v222_v16 = vpack.c.bf16 %v28_v15, %v27_v14  ;;  %v29_v17 = vld [vmem:[%s380_s1 + $0x50] sm:$0xff]  ;;  %v30_v18 = vld [vmem:[%s380_s1 + $0x58] sm:$0xff]  ;;  %v31_v20 = vld [vmem:[%s380_s1 + $0x60] sm:$0xff]  ;;  %s136_s27 = sshll.u32 %s281_s26, 4  ;;  %s137_s27 = int_to_ptr.vmem [resolvable:$true] %s136_s27 }
   0xa   :  { %215 = vmatprep.subr.bf16.mxu0 %v214_v8  ;;  %240 = vmatprep.subr.bf16.mxu1 %v214_v8  ;;  %v226_v19 = vpack.c.bf16 %v30_v18, %v29_v17  ;;  %v32_v21 = vld [vmem:[%s380_s1 + $0x68] sm:$0xff]  ;;  %v33_v23 = vld [vmem:[%s380_s1 + $0x70] sm:$0xff]  ;;  %v34_v24 = vld [vmem:[%s380_s1 + $0x78] sm:$0xff]  ;;  %p262_p1 = scmp.lt.s32.totalorder %s137_s27, %s137_s27 }
   0xb   :  { %v230_v22 = vpack.c.bf16 %v32_v21, %v31_v20  ;;  %v234_v25 = vpack.c.bf16 %v34_v24, %v33_v23  ;;  %v16_v26 = vld [vmem:[%s379_s0 + $0x8] sm:$0xff]  ;;  %v18_v27 = vld [vmem:[%s379_s0 + $0x18] sm:$0xff]  ;;  %v147_v28 = vld [vmem:[%s381_s2] ss:$0 sm:$0xff]  ;;  %s257_s0 = scalar_lea.vmem %s137_s27, 512 }
   0xc   :  { %p258_p0 = scmp.ne.s32.totalorder %s137_s27, %s257_s0  ;;  %p263_p2 = scmp.lt.s32.totalorder %s257_s0, %s257_s0 }
   0xd   :  { %217 = vmatpush3.bf16.msra.mxu0 %v214_v8  ;;  %248 = vmatpush3.bf16.msra.mxu1 %v214_v8 }
   0xe   :  { %219 = vmatprep.subr.bf16.mxu0 %v218_v13  ;;  %241 = vmatprep.subr.bf16.mxu1 %v218_v13  ;;  %p264_p3 = por %p263_p2, %p262_p1 }
  0x10   :  { %p265_p4 = pnand %p264_p3, %p258_p0 }
  0x11   :  { %221 = vmatpush3.bf16.msra.mxu0 %v218_v13  ;;  %249 = vmatpush3.bf16.msra.mxu1 %v218_v13 }
  0x12   :  { %223 = vmatprep.subr.bf16.mxu0 %v222_v16  ;;  %242 = vmatprep.subr.bf16.mxu1 %v222_v16 }
  0x15   :  { %225 = vmatpush3.bf16.msra.mxu0 %v222_v16  ;;  %250 = vmatpush3.bf16.msra.mxu1 %v222_v16 }
  0x16   :  { %227 = vmatprep.subr.bf16.mxu0 %v226_v19  ;;  %243 = vmatprep.subr.bf16.mxu1 %v226_v19 }
  0x19   :  { %229 = vmatpush3.bf16.msra.mxu0 %v226_v19  ;;  %251 = vmatpush3.bf16.msra.mxu1 %v226_v19 }
  0x1a   :  { %231 = vmatprep.subr.bf16.mxu0 %v230_v22  ;;  %244 = vmatprep.subr.bf16.mxu1 %v230_v22 }
  0x1d   :  { %233 = vmatpush3.bf16.msra.mxu0 %v230_v22  ;;  %252 = vmatpush3.bf16.msra.mxu1 %v230_v22 }
  0x1e   :  { %235 = vmatprep.subr.bf16.mxu0 %v234_v25  ;;  %245 = vmatprep.subr.bf16.mxu1 %v234_v25 }
  0x21   :  { %237 = vmatpush3.bf16.msra.mxu0 %v234_v25  ;;  %253 = vmatpush3.bf16.msra.mxu1 %v234_v25 }
  0x24   :  { %201 = vmatmul.mubr.f32.vlgmr.msra.gmra.mrb[0].mxu0 %v16_v26  ;;  %204 = vmatmul.mubr.f32.vlgmr.msra.gmra.mrb[0].mxu1 %v18_v27 }
  0xf7   :  { %v202_v29 = vpop.f32.mrb[0].mxu0  ;;  %v205_v30 = vpop.f32.mrb[0].mxu1 }
  0xf8   :  { %v114_v31 = vadd.f32 %v202_v29, %v147_v28  ;;  %v124_v32 = vadd.f32 %v205_v30, %v147_v28  ;;  %v108_v33 = vpop.f32.mrb[1].mxu0  ;;  %v118_v34 = vpop.f32.mrb[1].mxu1 }
  0xf9   :  { %v109_v35 = vadd.f32 %v147_v28, %v108_v33  ;;  %v119_v36 = vadd.f32 %v147_v28, %v118_v34 }
  0xfa   :  { %128 = vst [vmem:[#allocation2 + $0x8] sm:$0xff] %v114_v31  ;;  %130 = vst [vmem:[#allocation2 + $0x18] sm:$0xff] %v124_v32 }
  0xfb   :  { %127 = vst [vmem:[#allocation2] sm:$0xff] %v109_v35  ;;  %129 = vst [vmem:[#allocation2 + $0x10] sm:$0xff] %v119_v36 }
  0xfc   :  { %268 = shalt.err (!%p265_p4)
}
  0xfd   :  { %s269_s29 = scalar_lea.hbm %s382_s3, 512 }
  0xfe   :  { %p270_p5 = scmp.ne.s32.totalorder %s382_s3, %s269_s29  ;;  %p273_p6 = scmp.lt.u32.totalorder %s269_s29, %s382_s3 }
 0x100   :  { %p275_p7 = pnand %p273_p6, %p270_p5 }
 0x102   :  { %278 = shalt.err (!%p275_p7)
}
 0x103   :  { %s282_s7 = smov 128   ;;  %s283_s8 = smov 8  }
 0x104   :  { %142 = dma.vmem_to_hbm [thread:$0]  %s137_s27, 512, %s382_s3, [#allocation3], %s282_s7, %s282_s7, %s283_s8  }
 0x105   :  { %279 = dma.done.wait [#allocation3], 512  }
 0x106   :  { %280 = vsyncadd [#allocation3], 4294966784 }
 0x107   :  { %146 = vsyncpa [#allocation3], 1 }

</bundles_post_ra>
